<compile_context>
chip_gen: v7x
topology: tpu7x:2x2x1
jax: 0.10.0
libtpu: 0.0.40
codegen_flags: <defaults>
</compile_context>

<pallas_src>
import functools

import jax
import jax.numpy as jnp
from jax import lax
from jax.experimental import pallas as pl
from jax.experimental.pallas import tpu as pltpu


def _round_up(x, m):
    return ((x + m - 1) // m) * m


def value_kernel(obs_ref, w1_ref, b1_ref, w2_ref, b2_ref, w3_ref, b3_ref,
                 out_ref, *, matmul_dtype):
    # layer 1: Linear + ReLU   (MXU matmul, f32 accumulate, f32 epilogue)
    h = jnp.dot(obs_ref[...].astype(matmul_dtype),
                w1_ref[...].astype(matmul_dtype),
                preferred_element_type=jnp.float32)
    h = jnp.maximum(h + b1_ref[...], 0.0)

    # layer 2: Linear + ReLU
    h = jnp.dot(h.astype(matmul_dtype),
                w2_ref[...].astype(matmul_dtype),
                preferred_element_type=jnp.float32)
    h = jnp.maximum(h + b2_ref[...], 0.0)

    # value head: w3 is [1, H]; contract H against h [tb, H] -> [1, tb]
    # (lane-dense row, composes with the dense (1, tb) output store).
    v = lax.dot_general(w3_ref[...], h,
                        dimension_numbers=(((1,), (1,)), ((), ())),
                        preferred_element_type=jnp.float32)
    out_ref[...] = (v + b3_ref[0, 0]).astype(out_ref.dtype)


@functools.partial(jax.jit, static_argnames=("tb", "matmul_dtype"))
def value_forward(obs, params, *, tb=512, matmul_dtype=jnp.float32):
    """obs: [B, obs_dim] f32.  Returns [B] f32 (matches .squeeze(-1))."""
    B, obs_dim = obs.shape
    hidden = params["w1"].shape[1]

    # Batch tile: multiple of 128 (keeps the (1, tb) output store unmasked),
    # no larger than the 128-padded batch, and small enough to leave >=2 grid
    # blocks when the batch allows it (v7x megacore sharding).
    bp_min = _round_up(B, 128)
    tb = min(_round_up(max(tb, 128), 128), bp_min)
    if bp_min // tb < 2 and bp_min >= 256:
        tb = _round_up(pl.cdiv(bp_min, 2), 128)

    num_blocks = pl.cdiv(bp_min, tb)
    Bp = num_blocks * tb
    if Bp != B:                       # pad ragged batch; junk rows sliced off
        obs = jnp.pad(obs, ((0, Bp - B), (0, 0)))

    def resident(shape):
        # weights/biases: constant block index -> stay VMEM-resident
        return pl.BlockSpec(shape, lambda i: (0, 0))

    out = pl.pallas_call(
        functools.partial(value_kernel, matmul_dtype=matmul_dtype),
        out_shape=jax.ShapeDtypeStruct((1, Bp), jnp.float32),
        grid=(num_blocks,),
        in_specs=[
            pl.BlockSpec((tb, obs_dim), lambda i: (i, 0)),      # obs tile
            resident((obs_dim, hidden)), resident((1, hidden)),  # w1, b1
            resident((hidden, hidden)),  resident((1, hidden)),  # w2, b2
            resident((1, hidden)),                                # w3 row
            pl.BlockSpec(memory_space=pltpu.MemorySpace.SMEM),    # b3 scalar
        ],
        out_specs=pl.BlockSpec((1, tb), lambda i: (0, i)),        # lane-dense
        compiler_params=pltpu.CompilerParams(
            dimension_semantics=("parallel",)),
    )(obs, params["w1"], params["b1"], params["w2"], params["b2"],
      params["w3"], params["b3"])

    return out[0, :B]


def init_params(key, obs_dim, hidden):
    """nn.Linear-style U(-1/sqrt(fan_in), 1/sqrt(fan_in)) init.

    w1/w2 stored [in, out]; biases as [1, out] rows; the head weight w3 is
    stored pre-transposed as a [1, hidden] row and b3 as a (1,1) scalar, so
    no per-call reshape/transpose is needed.
    """
    ks = jax.random.split(key, 6)

    def lin(kw, kb, fan_in, fan_out, w_shape, b_shape):
        bound = 1.0 / jnp.sqrt(fan_in)
        w = jax.random.uniform(kw, w_shape, jnp.float32, -bound, bound)
        b = jax.random.uniform(kb, b_shape, jnp.float32, -bound, bound)
        return w, b

    w1, b1 = lin(ks[0], ks[1], obs_dim, hidden, (obs_dim, hidden), (1, hidden))
    w2, b2 = lin(ks[2], ks[3], hidden, hidden, (hidden, hidden), (1, hidden))
    w3, b3 = lin(ks[4], ks[5], hidden, 1, (1, hidden), (1, 1))  # w3 as row
    return dict(w1=w1, b1=b1, w2=w2, b2=b2, w3=w3, b3=b3)


def value_ref(obs, params):
    """Pure-JAX reference of the PyTorch forward."""
    h = jnp.maximum(obs @ params["w1"] + params["b1"], 0.0)
    h = jnp.maximum(h @ params["w2"] + params["b2"], 0.0)
    return h @ params["w3"][0] + params["b3"][0, 0]


if __name__ == "__main__":
    key = jax.random.PRNGKey(0)
    k_obs, k_par = jax.random.split(key)

    B, obs_dim, hidden = 256, 16, 128   # small shapes; grid of 2 batch tiles
    obs = jax.random.normal(k_obs, (B, obs_dim), jnp.float32)
    params = init_params(k_par, obs_dim, hidden)

    v = value_forward(obs, params)      # f32 matmul path (default)
    jax.block_until_ready(v)

    v_r = value_ref(obs, params)
    assert v.shape == (B,)
    assert jnp.allclose(v, v_r, atol=1e-4, rtol=1e-4)

    # Optional v5e path: bf16 matmul operands, f32 accumulate/epilogue.
    v_bf16 = value_forward(obs, params, matmul_dtype=jnp.bfloat16)
    jax.block_until_ready(v_bf16)
    assert jnp.allclose(v_bf16, v_r, atol=5e-2, rtol=5e-2)

    print("KERNEL_OK")
</pallas_src>

<mosaic_0001>
module attributes {stable_mosaic.version = 11 : i64} {
  func.func @value_kernel(%arg0: i32, %arg1: memref<128x16xf32, #tpu.memory_space<vmem>>, %arg2: memref<16x128xf32, #tpu.memory_space<vmem>>, %arg3: memref<1x128xf32, #tpu.memory_space<vmem>>, %arg4: memref<128x128xf32, #tpu.memory_space<vmem>>, %arg5: memref<1x128xf32, #tpu.memory_space<vmem>>, %arg6: memref<1x128xf32, #tpu.memory_space<vmem>>, %arg7: memref<1x1xf32, #tpu.memory_space<smem>>, %arg8: memref<1x128xf32, #tpu.memory_space<vmem>>) attributes {dimension_semantics = [#tpu.dimension_semantics<parallel>], iteration_bounds = array<i64: 2>, scalar_prefetch = 0 : i64, scratch_operands = 0 : i64, tpu.core_type = #tpu.core_type<tc>, window_params = [{transform_indices = @transform_0, window_bounds = array<i64: 128, 16>}, {pipeline_mode = #tpu.pipeline_mode<synchronous>, transform_indices = @transform_1, window_bounds = array<i64: 16, 128>}, {pipeline_mode = #tpu.pipeline_mode<synchronous>, transform_indices = @transform_2, window_bounds = array<i64: 1, 128>}, {pipeline_mode = #tpu.pipeline_mode<synchronous>, transform_indices = @transform_3, window_bounds = array<i64: 128, 128>}, {pipeline_mode = #tpu.pipeline_mode<synchronous>, transform_indices = @transform_4, window_bounds = array<i64: 1, 128>}, {pipeline_mode = #tpu.pipeline_mode<synchronous>, transform_indices = @transform_5, window_bounds = array<i64: 1, 128>}, {transform_indices = @transform_6, window_bounds = array<i64: 1, 1>}, {transform_indices = @transform_7, window_bounds = array<i64: 1, 128>}]} {
    %c0 = arith.constant 0 : index
    %c0_0 = arith.constant 0 : index
    %0 = vector.load %arg1[%c0, %c0_0] : memref<128x16xf32, #tpu.memory_space<vmem>>, vector<128x16xf32>
    %c0_1 = arith.constant 0 : index
    %c0_2 = arith.constant 0 : index
    %1 = vector.load %arg2[%c0_1, %c0_2] : memref<16x128xf32, #tpu.memory_space<vmem>>, vector<16x128xf32>
    %cst = arith.constant dense<0.000000e+00> : vector<128x128xf32>
    %2 = tpu.matmul %0, %1, %cst {dimension_numbers = #tpu.dot_dimension_numbers<[1], [0], [0], [1], [0, 0, 1, 1], [], []>} : vector<128x16xf32>, vector<16x128xf32>, vector<128x128xf32> -> vector<128x128xf32>
    %c0_3 = arith.constant 0 : index
    %c0_4 = arith.constant 0 : index
    %3 = vector.load %arg3[%c0_3, %c0_4] : memref<1x128xf32, #tpu.memory_space<vmem>>, vector<1x128xf32>
    %4 = vector.broadcast %3 : vector<1x128xf32> to vector<128x128xf32>
    %5 = arith.addf %2, %4 : vector<128x128xf32>
    %cst_5 = arith.constant 0.000000e+00 : f32
    %6 = vector.broadcast %cst_5 : f32 to vector<128x128xf32>
    %7 = arith.maximumf %5, %6 : vector<128x128xf32>
    %c0_6 = arith.constant 0 : index
    %c0_7 = arith.constant 0 : index
    %8 = vector.load %arg4[%c0_6, %c0_7] : memref<128x128xf32, #tpu.memory_space<vmem>>, vector<128x128xf32>
    %cst_8 = arith.constant dense<0.000000e+00> : vector<128x128xf32>
    %9 = tpu.matmul %7, %8, %cst_8 {dimension_numbers = #tpu.dot_dimension_numbers<[1], [0], [0], [1], [0, 0, 1, 1], [], []>} : vector<128x128xf32>, vector<128x128xf32>, vector<128x128xf32> -> vector<128x128xf32>
    %c0_9 = arith.constant 0 : index
    %c0_10 = arith.constant 0 : index
    %10 = vector.load %arg5[%c0_9, %c0_10] : memref<1x128xf32, #tpu.memory_space<vmem>>, vector<1x128xf32>
    %11 = vector.broadcast %10 : vector<1x128xf32> to vector<128x128xf32>
    %12 = arith.addf %9, %11 : vector<128x128xf32>
    %cst_11 = arith.constant 0.000000e+00 : f32
    %13 = vector.broadcast %cst_11 : f32 to vector<128x128xf32>
    %14 = arith.maximumf %12, %13 : vector<128x128xf32>
    %c0_12 = arith.constant 0 : index
    %c0_13 = arith.constant 0 : index
    %15 = vector.load %arg6[%c0_12, %c0_13] : memref<1x128xf32, #tpu.memory_space<vmem>>, vector<1x128xf32>
    %cst_14 = arith.constant dense<0.000000e+00> : vector<1x128xf32>
    %16 = tpu.matmul %15, %14, %cst_14 {dimension_numbers = #tpu.dot_dimension_numbers<[1], [1], [0], [0], [0, 0, 1, 0], [], []>} : vector<1x128xf32>, vector<128x128xf32>, vector<1x128xf32> -> vector<1x128xf32>
    %c0_15 = arith.constant 0 : index
    %c0_16 = arith.constant 0 : index
    %17 = memref.load %arg7[%c0_15, %c0_16] : memref<1x1xf32, #tpu.memory_space<smem>>
    %18 = vector.broadcast %17 : f32 to vector<1x128xf32>
    %19 = arith.addf %16, %18 : vector<1x128xf32>
    %c0_17 = arith.constant 0 : index
    %c0_18 = arith.constant 0 : index
    %20 = vector.load %arg8[%c0_17, %c0_18] : memref<1x128xf32, #tpu.memory_space<vmem>>, vector<1x128xf32>
    tpu.vector_store %arg8[%c0_17, %c0_18], %19 {strides = array<i32>} : memref<1x128xf32, #tpu.memory_space<vmem>>, vector<1x128xf32>,
    return
  }
  func.func @transform_0(%arg0: i32) -> (i32, i32) {
    %c0_i32 = arith.constant 0 : i32
    %c0_i32_0 = arith.constant 0 : i32
    return %arg0, %c0_i32 : i32, i32
  }
  func.func @transform_1(%arg0: i32) -> (i32, i32) {
    %c0_i32 = arith.constant 0 : i32
    %c0_i32_0 = arith.constant 0 : i32
    %c0_i32_1 = arith.constant 0 : i32
    return %c0_i32, %c0_i32_0 : i32, i32
  }
  func.func @transform_2(%arg0: i32) -> (i32, i32) {
    %c0_i32 = arith.constant 0 : i32
    %c0_i32_0 = arith.constant 0 : i32
    %c0_i32_1 = arith.constant 0 : i32
    return %c0_i32, %c0_i32_0 : i32, i32
  }
  func.func @transform_3(%arg0: i32) -> (i32, i32) {
    %c0_i32 = arith.constant 0 : i32
    %c0_i32_0 = arith.constant 0 : i32
    %c0_i32_1 = arith.constant 0 : i32
    return %c0_i32, %c0_i32_0 : i32, i32
  }
  func.func @transform_4(%arg0: i32) -> (i32, i32) {
    %c0_i32 = arith.constant 0 : i32
    %c0_i32_0 = arith.constant 0 : i32
    %c0_i32_1 = arith.constant 0 : i32
    return %c0_i32, %c0_i32_0 : i32, i32
  }
  func.func @transform_5(%arg0: i32) -> (i32, i32) {
    %c0_i32 = arith.constant 0 : i32
    %c0_i32_0 = arith.constant 0 : i32
    %c0_i32_1 = arith.constant 0 : i32
    return %c0_i32, %c0_i32_0 : i32, i32
  }
  func.func @transform_6(%arg0: i32) -> (i32, i32) {
    %c0_i32 = arith.constant 0 : i32
    %c0_i32_0 = arith.constant 0 : i32
    %c0_i32_1 = arith.constant 0 : i32
    return %c0_i32, %c0_i32_0 : i32, i32
  }
  func.func @transform_7(%arg0: i32) -> (i32, i32) {
    %c0_i32 = arith.constant 0 : i32
    %c0_i32_0 = arith.constant 0 : i32
    return %c0_i32, %arg0 : i32, i32
  }
}

</mosaic_0001>

<bundles_post_ra>
// kernel: value_forward.1
= control target key start
LH: loop header
LB: loop body
LE: loop exit
PB: predicated region body
PF: predicated region fallthrough
CT: control target
= control target key end

     0   :  { %s1470_s0 = inlined_call_operand.vmem [shape: f32[256,16], index: 0, kind: input, shape index: {}]   ;;  %s1471_s1 = inlined_call_operand.vmem [shape: f32[16,128], index: 1, kind: input, shape index: {}]   ;;  %s1472_s2 = inlined_call_operand.vmem [shape: f32[1,128], index: 2, kind: input, shape index: {}]   ;;  %s1473_s3 = inlined_call_operand.vmem [shape: f32[128,128], index: 3, kind: input, shape index: {}]   ;;  %s1474_s4 = inlined_call_operand.vmem [shape: f32[1,128], index: 4, kind: input, shape index: {}]   ;;  %s1475_s5 = inlined_call_operand.vmem [shape: f32[1,128], index: 5, kind: input, shape index: {}]   ;;  %s1476_s6 = inlined_call_operand.<no memory space> [shape: f32[1,1], index: 6, kind: input, shape index: {}]   ;;  %s1477_s7 = inlined_call_operand.hbm [shape: f32[1,256], index: 7, kind: output, shape index: {}]  }
   0x1   :  { %12 = sst [smem:[#allocation2]] %s1476_s6 }
   0x2   :  { %13 = vsyncpa [#allocation4], 0 }
   0x3   :  { %15 = vsyncpa [#allocation4 + $0x1], 0  ;;  %s1266_s26 = smov 0   ;;  %s1268_s27 = smov 0  }
   0x4   :  { %s1270_s28 = smov 0   ;;  %s1272_s29 = smov 0  }
   0x5 LB: > { %s839_s6 = sadd.s32 4294967295, %s1217_s29   ;;  %s840_s30 = sadd.s32 4294967294, %s1217_s29   ;;  %s1217_s29 = sphi %s1272_s29, %s1483_s29   ;;  %s1213_s28 = sphi %s1270_s28, %s1482_s28   ;;  %s1209_s27 = sphi %s1268_s27, %s1481_s27   ;;  %s1205_s26 = sphi %s1266_s26, %s1480_s26  }
   0x6   : > { %s1289_s8 = sadd.s32 1, %s1217_s29   ;;  %s180_s9 = sadd.s32 1, %s1213_s28 }
   0x7   : > { %s177_s10 = ssub.s32 %s1217_s29, %s1289_s8  ;;  %p190_p0 = scmp.ne.s32.totalorder %s1213_s28, %s1209_s27 }
   0x8   : > { %p178_p1 = scmp.eq.s32.totalorder %s177_s10, 0  ;;  %p191_p2 = scmp.eq.s32.totalorder %s839_s6, 1 }
   0x9   : > { %p196_p3 = scmp.ne.s32.totalorder %s1209_s27, %s1205_s26  ;;  %p197_p4 = scmp.eq.s32.totalorder %s840_s30, 1 }
   0xa   : > { %s1299_s11 = scalar_select %p178_p1, %s1213_s28, %s180_s9  }
   0xb   : > { %p1301_p5 = por %p191_p2, %p190_p0  ;;  %p1305_p6 = por %p197_p4, %p196_p3 }
   0xc   : > { %p843_p7 = scmp.ge.s32.totalorder %s1217_s29, 1  ;;  %p242_p8 = scmp.lt.s32.totalorder %s1217_s29, 3 }
   0xe   : > { %p243_p9 = pnand %p843_p7, %p242_p8 }
   0xf   : > { %v295_v0 = vld [vmem:[%s1471_s1] sm:$0xff] (!%p243_p9)  ;;  %v296_v1 = vld [vmem:[%s1471_s1 + $0x8] sm:$0xff] (!%p243_p9)  ;;  %s1317_s18 = sshll.u32 (!%p243_p9), %s839_s6, 4  ;;  %v516_v6 = vld [vmem:[%s1473_s3 + $0x10] sm:$0xff] (!%p243_p9)  ;;  %vm304_vm0 = vcmask (!%p243_p9), 130048   ;;  %vm1220_vm1 = vmmov (!%p243_p9), 0  }
  0x10   : > { %246 = sbr.rel (%p243_p9) target bundleno = 757 (0x2f5), region = 48  ;;  %v514_v2 = vld [vmem:[%s1473_s3] sm:$0xff] (!%p243_p9)  ;;  %v1053_v3 = vpack.c.bf16 (!%p243_p9), %v296_v1, %v295_v0  ;;  %p274_p10 = scmp.lt.s32.totalorder (!%p243_p9), %s1317_s18, 31  ;;  %v515_v4 = vld [vmem:[%s1473_s3 + $0x8] sm:$0xff] (!%p243_p9)  ;;  %v517_v7 = vld [vmem:[%s1473_s3 + $0x18] sm:$0xff] (!%p243_p9) }
  0x11   : > { %v1057_v5 = vpack.c.bf16 (!%p243_p9), %v515_v4, %v514_v2  ;;  %v1061_v11 = vpack.c.bf16 (!%p243_p9), %v517_v7, %v516_v6  ;;  %v518_v12 = vld [vmem:[%s1473_s3 + $0x20] sm:$0xff] (!%p243_p9)  ;;  %v519_v13 = vld [vmem:[%s1473_s3 + $0x28] sm:$0xff] (!%p243_p9)  ;;  %v520_v17 = vld [vmem:[%s1473_s3 + $0x30] sm:$0xff] (!%p243_p9)  ;;  %s699_s17 = sld [smem:[#allocation2]] (!%p243_p9)  ;;  %s271_s19 = sand.u32 (!%p243_p9), 1, %s1209_s27  }
  0x12   : > { %1054 = vmatprep.subr.bf16.mxu1 (!%p243_p9), %v1053_v3  ;;  %v1065_v16 = vpack.c.bf16 (!%p243_p9), %v519_v13, %v518_v12  ;;  %v521_v18 = vld [vmem:[%s1473_s3 + $0x38] sm:$0xff] (!%p243_p9)  ;;  %v522_v22 = vld [vmem:[%s1473_s3 + $0x40] sm:$0xff] (!%p243_p9)  ;;  %v523_v23 = vld [vmem:[%s1473_s3 + $0x48] sm:$0xff] (!%p243_p9)  ;;  %s272_s20 = scalar_lea.vmem (!%p243_p9), [#allocation3], %s271_s19  ;;  %s1428_s24 = scalar_lea.hbm (!%p243_p9), %s1477_s7, %s1317_s18 }
  0x13   : > { %1056 = vmatpush3.bf16.msra.mxu1 (!%p243_p9), %v1053_v3  ;;  %v1069_v21 = vpack.c.bf16 (!%p243_p9), %v521_v18, %v520_v17  ;;  %v1073_v26 = vpack.c.bf16 (!%p243_p9), %v523_v23, %v522_v22  ;;  %v524_v27 = vld [vmem:[%s1473_s3 + $0x50] sm:$0xff] (!%p243_p9)  ;;  %v525_v28 = vld [vmem:[%s1473_s3 + $0x58] sm:$0xff] (!%p243_p9)  ;;  %v526_v32 = vld [vmem:[%s1473_s3 + $0x60] sm:$0xff] (!%p243_p9)  ;;  %s785_s21 = sshll.u32 (!%p243_p9), %s272_s20, 4  ;;  %s773_s25 = scalar_lea.sflag (!%p243_p9), [#allocation4], %s271_s19  ;;  %s1430_s21 = int_to_ptr.vmem [resolvable:$true] %s785_s21 }
  0x14   : > { %1058 = vmatprep.subr.bf16.mxu1 (!%p243_p9), %v1057_v5  ;;  %v1077_v31 = vpack.c.bf16 (!%p243_p9), %v525_v28, %v524_v27  ;;  %v527_v33 = vld [vmem:[%s1473_s3 + $0x68] sm:$0xff] (!%p243_p9)  ;;  %v528_v40 = vld [vmem:[%s1473_s3 + $0x70] sm:$0xff] (!%p243_p9)  ;;  %v529_v41 = vld [vmem:[%s1473_s3 + $0x78] sm:$0xff] (!%p243_p9)  ;;  %v1219_v28 = vmov (!%p243_p9), 0.0|0.0   ;;  %s1155_s6 = scalar_lea.vmem (!%p243_p9), %s1430_s21, 16  ;;  %s1222_s30 = smov (!%p243_p9), [#allocation3]  }
  0x15   : > { %v1081_v36 = vpack.c.bf16 (!%p243_p9), %v527_v33, %v526_v32  ;;  %v1085_v42 = vpack.c.bf16 (!%p243_p9), %v529_v41, %v528_v40  ;;  %v846_v43 = vld [vmem:[%s1472_s2] ss:$0 sm:$0xff] (!%p243_p9)  ;;  %1089 = vmatprep.subr.bf16.mxu0 (!%p243_p9), %v1219_v28  ;;  %p1156_p11 = scmp.ne.s32.totalorder (!%p243_p9), %s1430_s21, %s1155_s6 }
  0x17   : > { %s275_s23 = scalar_select %p274_p10, %s1317_s18, 31 }
  0x18   : > { %p1157_p12 = pnand %p1156_p11, %p1301_p5 }
  0x19   : > { %s845_s9 = sshll.u32 %s275_s23, 3 }
  0x1a   : > { %s1336_s15 = scalar_lea.vmem %s1470_s0, %s845_s9  ;;  %p1158_p13 = pneg %p1157_p12 }
  0x1b   : > { %v279_v8 = vld [vmem:[%s1336_s15] sm:$0xff]  ;;  %v280_v9 = vld [vmem:[%s1336_s15 + $0x8] sm:$0xff]  ;;  %v281_v10 = vld [vmem:[%s1336_s15 + $0x10] sm:$0xff]  ;;  %s1159_s9 = sshll.u32 %s1222_s30, 4  ;;  %s1160_s9 = int_to_ptr.vmem [resolvable:$false] %s1159_s9 }
  0x1c   : > { %938 = vmatprep.mubr.msk.f32.mxu1 %vm304_vm0, %v279_v8  ;;  %v282_v14 = vld [vmem:[%s1336_s15 + $0x18] sm:$0xff]  ;;  %v283_v15 = vld [vmem:[%s1336_s15 + $0x20] sm:$0xff]  ;;  %v284_v19 = vld [vmem:[%s1336_s15 + $0x28] sm:$0xff]  ;;  %p1162_p0 = scmp.lt.s32.totalorder %s1430_s21, %s1160_s9 }
  0x1d   : > { %939 = vmatmul.mubr.msk.f32.vlgmr.msra.gmra.mrb[0].mxu1 %vm304_vm0, %v280_v9  ;;  %v285_v20 = vld [vmem:[%s1336_s15 + $0x30] sm:$0xff]  ;;  %v286_v24 = vld [vmem:[%s1336_s15 + $0x38] sm:$0xff]  ;;  %v287_v25 = vld [vmem:[%s1336_s15 + $0x40] sm:$0xff] }
  0x1e   : > { %941 = vmatprep.mubr.msk.f32.mxu1 %vm304_vm0, %v281_v10  ;;  %1060 = vmatpush3.bf16.msra.mxu1 %v1057_v5  ;;  %v288_v29 = vld [vmem:[%s1336_s15 + $0x48] sm:$0xff]  ;;  %v289_v30 = vld [vmem:[%s1336_s15 + $0x50] sm:$0xff]  ;;  %v290_v34 = vld [vmem:[%s1336_s15 + $0x58] sm:$0xff] }
  0x1f   : > { %1062 = vmatprep.subr.bf16.mxu1 %v1061_v11  ;;  %v291_v35 = vld [vmem:[%s1336_s15 + $0x60] sm:$0xff]  ;;  %v292_v37 = vld [vmem:[%s1336_s15 + $0x68] sm:$0xff]  ;;  %v293_v38 = vld [vmem:[%s1336_s15 + $0x70] sm:$0xff] }
  0x20   : > { %v294_v39 = vld [vmem:[%s1336_s15 + $0x78] sm:$0xff]  ;;  %s1161_s15 = scalar_lea.vmem %s1160_s9, 32 }
  0x21   : > { %942 = vmatmul.mubr.msk.f32.gmra.mrb[2].mxu1 %vm304_vm0, %v282_v14  ;;  %p1163_p1 = scmp.lt.s32.totalorder %s1161_s15, %s1155_s6 }
  0x22   : > { %944 = vmatprep.mubr.msk.f32.mxu1 %vm304_vm0, %v283_v15  ;;  %1064 = vmatpush3.bf16.msra.mxu1 %v1061_v11 }
  0x23   : > { %1066 = vmatprep.subr.bf16.mxu1 %v1065_v16  ;;  %p1164_p2 = por %p1163_p1, %p1162_p0 }
  0x25   : > { %945 = vmatmul.mubr.msk.f32.gmra.mrb[4].mxu1 %vm304_vm0, %v284_v19  ;;  %p1165_p3 = pnand %p1164_p2, %p1158_p13 }
  0x26   : > { %947 = vmatprep.mubr.msk.f32.mxu1 %vm304_vm0, %v285_v20  ;;  %1068 = vmatpush3.bf16.msra.mxu1 %v1065_v16 }
  0x27   : > { %1070 = vmatprep.subr.bf16.mxu1 %v1069_v21 }
  0x29   : > { %948 = vmatmul.mubr.msk.f32.gmra.mrb[6].mxu1 %vm304_vm0, %v286_v24 }
  0x2a   : > { %950 = vmatprep.mubr.msk.f32.mxu1 %vm304_vm0, %v287_v25  ;;  %1072 = vmatpush3.bf16.msra.mxu1 %v1069_v21 }
  0x2b   : > { %1074 = vmatprep.subr.bf16.mxu1 %v1073_v26 }
  0x2d   : > { %951 = vmatmul.mubr.msk.f32.gmra.mrb[8].mxu1 %vm304_vm0, %v288_v29  ;;  %v1221_v29 = vmov 0.0  }
  0x2e   : > { %953 = vmatprep.mubr.msk.f32.mxu1 %vm304_vm0, %v289_v30  ;;  %1076 = vmatpush3.bf16.msra.mxu1 %v1073_v26  ;;  %v863_v30 = vld [vmem:[%s1474_s4] ss:$0 sm:$0xff] }
  0x2f   : > { %1078 = vmatprep.subr.bf16.mxu1 %v1077_v31  ;;  %1050 = vmatprep.mubr.msk.f32.mxu0 %vm1220_vm1, %v1221_v29 }
  0x31   : > { %954 = vmatmul.mubr.msk.f32.gmra.mrb[10].mxu1 %vm304_vm0, %v290_v34 }
  0x32   : > { %956 = vmatprep.mubr.msk.f32.mxu1 %vm304_vm0, %v291_v35  ;;  %1080 = vmatpush3.bf16.msra.mxu1 %v1077_v31 }
  0x33   : > { %1082 = vmatprep.subr.bf16.mxu1 %v1081_v36 }
  0x35   : > { %957 = vmatmul.mubr.msk.f32.gmra.mrb[12].mxu1 %vm304_vm0, %v292_v37 }
  0x36   : > { %959 = vmatprep.mubr.msk.f32.mxu1 %vm304_vm0, %v293_v38  ;;  %1084 = vmatpush3.bf16.msra.mxu1 %v1081_v36 }
  0x37   : > { %1086 = vmatprep.subr.bf16.mxu1 %v1085_v42 }
  0x39   : > { %960 = vmatmul.mubr.msk.f32.gmra.mrb[14].mxu1 %vm304_vm0, %v294_v39 }
  0x3a   : > { %1088 = vmatpush3.bf16.msra.mxu1 %v1085_v42 }
  0xf0   : > { %v940_v44 = vpop.f32.mrb[0].mxu1 }
  0xf1   : > { %v425_v45 = vadd.f32 %v940_v44, %v846_v43  ;;  %v419_v46 = vpop.f32.mrb[1].mxu1 }
  0xf2   : > { %v420_v47 = vadd.f32 %v846_v43, %v419_v46 }
  0xf3   : > { %v499_v50 = vmax.f32 %v425_v45, 0.0 }
  0xf4   : > { %v498_v48 = vmax.f32 %v420_v47, 0.0  ;;  %v943_v49 = vpop.f32.mrb[2].mxu1 }
  0xf5   : > { %v435_v51 = vadd.f32 %v943_v49, %v846_v43  ;;  %v429_v52 = vpop.f32.mrb[3].mxu1 }
  0xf6   : > { %v430_v53 = vadd.f32 %v846_v43, %v429_v52  ;;  %994 = vmatprep.mubr.f32.mxu1 %v498_v48 }
  0xf7   : > { %v501_v54 = vmax.f32 %v435_v51, 0.0  ;;  %995 = vmatmul.mubr.f32.vlgmr.msra.gmra.mrb[16].mxu1 %v499_v50 }
  0xf8   : > { %v500_v55 = vmax.f32 %v430_v53, 0.0  ;;  %v946_v56 = vpop.f32.mrb[4].mxu1 }
  0xf9   : > { %v445_v57 = vadd.f32 %v946_v56, %v846_v43  ;;  %v439_v58 = vpop.f32.mrb[5].mxu1 }
  0xfa   : > { %997 = vmatprep.mubr.f32.mxu1 %v500_v55  ;;  %v440_v59 = vadd.f32 %v846_v43, %v439_v58 }
  0xfb   : > { %998 = vmatmul.mubr.f32.gmra.mrb[18].mxu1 %v501_v54  ;;  %v503_v60 = vmax.f32 %v445_v57, 0.0 }
  0xfc   : > { %v502_v61 = vmax.f32 %v440_v59, 0.0  ;;  %v949_v62 = vpop.f32.mrb[6].mxu1 }
  0xfd   : > { %v455_v63 = vadd.f32 %v949_v62, %v846_v43  ;;  %v449_v0 = vpop.f32.mrb[7].mxu1 }
  0xfe   : > { %1000 = vmatprep.mubr.f32.mxu1 %v502_v61  ;;  %v450_v1 = vadd.f32 %v846_v43, %v449_v0 }
  0xff   : > { %1001 = vmatmul.mubr.f32.gmra.mrb[20].mxu1 %v503_v60  ;;  %v505_v2 = vmax.f32 %v455_v63, 0.0 }
 0x100   : > { %v504_v3 = vmax.f32 %v450_v1, 0.0  ;;  %v952_v4 = vpop.f32.mrb[8].mxu1 }
 0x101   : > { %v465_v5 = vadd.f32 %v952_v4, %v846_v43  ;;  %v459_v6 = vpop.f32.mrb[9].mxu1 }
 0x102   : > { %1003 = vmatprep.mubr.f32.mxu1 %v504_v3  ;;  %v460_v7 = vadd.f32 %v846_v43, %v459_v6 }
 0x103   : > { %1004 = vmatmul.mubr.f32.gmra.mrb[22].mxu1 %v505_v2  ;;  %v507_v8 = vmax.f32 %v465_v5, 0.0 }
 0x104   : > { %v506_v9 = vmax.f32 %v460_v7, 0.0  ;;  %v955_v10 = vpop.f32.mrb[10].mxu1 }
 0x105   : > { %v475_v11 = vadd.f32 %v955_v10, %v846_v43  ;;  %v469_v12 = vpop.f32.mrb[11].mxu1 }
 0x106   : > { %1006 = vmatprep.mubr.f32.mxu1 %v506_v9  ;;  %v470_v13 = vadd.f32 %v846_v43, %v469_v12 }
 0x107   : > { %1007 = vmatmul.mubr.f32.gmra.mrb[24].mxu1 %v507_v8  ;;  %v509_v14 = vmax.f32 %v475_v11, 0.0 }
 0x108   : > { %v508_v15 = vmax.f32 %v470_v13, 0.0  ;;  %v958_v16 = vpop.f32.mrb[12].mxu1 }
 0x109   : > { %v485_v17 = vadd.f32 %v958_v16, %v846_v43  ;;  %v479_v18 = vpop.f32.mrb[13].mxu1 }
 0x10a   : > { %1009 = vmatprep.mubr.f32.mxu1 %v508_v15  ;;  %v480_v19 = vadd.f32 %v846_v43, %v479_v18 }
 0x10b   : > { %1010 = vmatmul.mubr.f32.gmra.mrb[26].mxu1 %v509_v14  ;;  %v511_v20 = vmax.f32 %v485_v17, 0.0 }
 0x10c   : > { %v510_v21 = vmax.f32 %v480_v19, 0.0  ;;  %v961_v22 = vpop.f32.mrb[14].mxu1 }
 0x10d   : > { %v495_v23 = vadd.f32 %v961_v22, %v846_v43  ;;  %v489_v24 = vpop.f32.mrb[15].mxu1 }
 0x10e   : > { %1012 = vmatprep.mubr.f32.mxu1 %v510_v21  ;;  %v490_v25 = vadd.f32 %v846_v43, %v489_v24  ;;  %v700_v24 = vstv %s699_s17 }
 0x10f   : > { %1013 = vmatmul.mubr.f32.gmra.mrb[28].mxu1 %v511_v20  ;;  %v513_v26 = vmax.f32 %v495_v23, 0.0  ;;  %v698_v23 = vld [vmem:[%s1475_s5] sm:$0x1] }
 0x110   : > { %v512_v27 = vmax.f32 %v490_v25, 0.0 }
 0x112   : > { %1015 = vmatprep.mubr.f32.mxu1 %v512_v27 }
 0x113   : > { %1016 = vmatmul.mubr.f32.gmra.mrb[30].mxu1 %v513_v26 }
 0x1ca   : > { %v996_v31 = vpop.f32.mrb[16].mxu1 }
 0x1cb   : > { %v609_v32 = vadd.f32 %v996_v31, %v863_v30  ;;  %v603_v33 = vpop.f32.mrb[17].mxu1 }
 0x1cc   : > { %v604_v34 = vadd.f32 %v863_v30, %v603_v33 }
 0x1cd   : > { %v683_v35 = vmax.f32 %v609_v32, 0.0 }
 0x1ce   : > { %v682_v36 = vmax.f32 %v604_v34, 0.0  ;;  %v999_v37 = vpop.f32.mrb[18].mxu1 }
 0x1cf   : > { %v619_v38 = vadd.f32 %v999_v37, %v863_v30  ;;  %v613_v39 = vpop.f32.mrb[19].mxu1 }
 0x1d0   : > { %v614_v40 = vadd.f32 %v863_v30, %v613_v39  ;;  %v1090_v41 = vpack.c.bf16 %v683_v35, %v682_v36 }
 0x1d1   : > { %v685_v42 = vmax.f32 %v619_v38, 0.0 }
 0x1d2   : > { %v684_v43 = vmax.f32 %v614_v40, 0.0  ;;  %1091 = vmatpush3.bf16.xpose.msra.mxu0 %v1090_v41  ;;  %v1002_v44 = vpop.f32.mrb[20].mxu1 }
 0x1d3   : > { %v629_v45 = vadd.f32 %v1002_v44, %v863_v30  ;;  %v623_v46 = vpop.f32.mrb[21].mxu1  ;;  %1092 = vmatprep.subr.bf16.mxu0 %v1219_v28 }
 0x1d4   : > { %v1093_v47 = vpack.c.bf16 %v685_v42, %v684_v43  ;;  %v624_v48 = vadd.f32 %v863_v30, %v623_v46 }
 0x1d5   : > { %v687_v49 = vmax.f32 %v629_v45, 0.0 }
 0x1d6   : > { %v686_v50 = vmax.f32 %v624_v48, 0.0  ;;  %v1005_v51 = vpop.f32.mrb[22].mxu1 }
 0x1d7   : > { %v639_v52 = vadd.f32 %v1005_v51, %v863_v30  ;;  %v633_v53 = vpop.f32.mrb[23].mxu1 }
 0x1d8   : > { %v1096_v54 = vpack.c.bf16 %v687_v49, %v686_v50  ;;  %v634_v55 = vadd.f32 %v863_v30, %v633_v53 }
 0x1d9   : > { %v689_v56 = vmax.f32 %v639_v52, 0.0 }
 0x1da   : > { %1094 = vmatpush3.bf16.xpose.msra.mxu0 %v1093_v47  ;;  %v688_v57 = vmax.f32 %v634_v55, 0.0  ;;  %v1008_v58 = vpop.f32.mrb[24].mxu1 }
 0x1db   : > { %1095 = vmatprep.subr.bf16.mxu0 %v1219_v28  ;;  %v649_v59 = vadd.f32 %v1008_v58, %v863_v30  ;;  %v643_v60 = vpop.f32.mrb[25].mxu1 }
 0x1dc   : > { %v1099_v61 = vpack.c.bf16 %v689_v56, %v688_v57  ;;  %v644_v62 = vadd.f32 %v863_v30, %v643_v60 }
 0x1dd   : > { %v691_v63 = vmax.f32 %v649_v59, 0.0 }
 0x1de   : > { %v690_v0 = vmax.f32 %v644_v62, 0.0  ;;  %v1011_v1 = vpop.f32.mrb[26].mxu1 }
 0x1df   : > { %v659_v2 = vadd.f32 %v1011_v1, %v863_v30  ;;  %v653_v3 = vpop.f32.mrb[27].mxu1 }
 0x1e0   : > { %v1102_v4 = vpack.c.bf16 %v691_v63, %v690_v0  ;;  %v654_v5 = vadd.f32 %v863_v30, %v653_v3 }
 0x1e1   : > { %v693_v6 = vmax.f32 %v659_v2, 0.0 }
 0x1e2   : > { %1097 = vmatpush3.bf16.xpose.msra.mxu0 %v1096_v54  ;;  %v692_v7 = vmax.f32 %v654_v5, 0.0  ;;  %v1014_v8 = vpop.f32.mrb[28].mxu1 }
 0x1e3   : > { %1098 = vmatprep.subr.bf16.mxu0 %v1219_v28  ;;  %v669_v9 = vadd.f32 %v1014_v8, %v863_v30  ;;  %v663_v10 = vpop.f32.mrb[29].mxu1 }
 0x1e4   : > { %v1105_v11 = vpack.c.bf16 %v693_v6, %v692_v7  ;;  %v664_v12 = vadd.f32 %v863_v30, %v663_v10 }
 0x1e5   : > { %v695_v13 = vmax.f32 %v669_v9, 0.0 }
 0x1e6   : > { %v694_v14 = vmax.f32 %v664_v12, 0.0  ;;  %v1017_v15 = vpop.f32.mrb[30].mxu1 }
 0x1e7   : > { %v679_v16 = vadd.f32 %v1017_v15, %v863_v30  ;;  %v673_v17 = vpop.f32.mrb[31].mxu1 }
 0x1e8   : > { %v1108_v18 = vpack.c.bf16 %v695_v13, %v694_v14  ;;  %v674_v19 = vadd.f32 %v863_v30, %v673_v17 }
 0x1e9   : > { %v697_v20 = vmax.f32 %v679_v16, 0.0 }
 0x1ea   : > { %1100 = vmatpush3.bf16.xpose.msra.mxu0 %v1099_v61  ;;  %v696_v21 = vmax.f32 %v674_v19, 0.0 }
 0x1eb   : > { %1101 = vmatprep.subr.bf16.mxu0 %v1219_v28 }
 0x1ec   : > { %v1111_v22 = vpack.c.bf16 %v697_v20, %v696_v21 }
 0x1f2   : > { %1103 = vmatpush3.bf16.xpose.msra.mxu0 %v1102_v4 }
 0x1f3   : > { %1104 = vmatprep.subr.bf16.mxu0 %v1219_v28 }
 0x1fa   : > { %1106 = vmatpush3.bf16.xpose.msra.mxu0 %v1105_v11 }
 0x1fb   : > { %1107 = vmatprep.subr.bf16.mxu0 %v1219_v28 }
 0x202   : > { %1109 = vmatpush3.bf16.xpose.msra.mxu0 %v1108_v18 }
 0x203   : > { %1110 = vmatprep.subr.bf16.mxu0 %v1219_v28 }
 0x20a   : > { %1112 = vmatpush3.bf16.xpose.msra.mxu0 %v1111_v22 }
 0x211   : > { %1051 = vmatmul.mubr.f32.vlgmr.msra.gmra.mrb[0].mxu0 %v698_v23 }
 0x2e4   : > { %v767_v25 = vpop.f32.mrb[0].mxu0 }
 0x2e5   : > { %v768_v26 = vadd.f32 %v767_v25, %v700_v24  ;;  %v1052_v27 = vpop.f32.mrb[1].mxu0 }
 0x2e7   : > { %771 = vst [vmem:[%s272_s20] sm:$0x1] %v768_v26 }
 0x2e8   : > { %1168 = shalt.err (!%p1165_p3)
}
 0x2e9   : > { %s1169_s18 = scalar_lea.hbm %s1428_s24, 16  ;;  %s1173_s16 = scalar_lea.hbm %s1477_s7, 32 }
 0x2ea   : > { %p1170_p4 = scmp.ne.s32.totalorder %s1428_s24, %s1169_s18  ;;  %p1174_p9 = scmp.lt.u32.totalorder %s1428_s24, %s1477_s7 }
 0x2eb   : > { %p1175_p10 = scmp.lt.u32.totalorder %s1173_s16, %s1169_s18  ;;  %p1177_p12 = scmp.lt.u32.totalorder %s1169_s18, %s1428_s24 }
 0x2ec   : > { %p1171_p7 = pnand %p1170_p4, %p1301_p5 }
 0x2ed   : > { %p1176_p11 = por %p1175_p10, %p1174_p9 }
 0x2ee   : > { %p1172_p8 = pneg %p1171_p7 }
 0x2ef   : > { %p1178_p13 = por %p1177_p12, %p1176_p11 }
 0x2f1   : > { %p1179_p0 = pnand %p1178_p13, %p1172_p8 }
 0x2f3   : > { %1182 = shalt.err (!%p1179_p0)
}
 0x2f4   : > { %1113 = dma.vmem_to_hbm [thread:$0]  (%p1301_p5), %s1430_s21, 16, %s1428_s24, %s773_s25  }
 0x2f5 PF: > { %p1119_p1 = scmp.ge.s32.totalorder %s1217_s29, 2  ;;  %s797_s20 = sand.u32 1, %s1205_s26  }
 0x2f6   : > { %s798_s22 = scalar_lea.sflag [#allocation4], %s797_s20 }
 0x2f7   : > { %p1116_p2 = pnand %p1119_p1, %p1305_p6 }
 0x2f9   : > { %1200 = dma.done.wait (!%p1116_p2), %s798_s22, 16  }
 0x2fa   : > { %1202 = vsyncadd (!%p1116_p2), %s798_s22, 4294967280  ;;  %p18_p3 = scmp.ge.s32.totalorder %s1289_s8, 4   ;;  %s1480_s26 = smov %s1209_s27 }
 0x2fb   : > { %s1481_s27 = smov %s1213_s28  ;;  %s1482_s28 = smov %s1299_s11 }
 0x2fc   : > { %s1483_s29 = smov %s1289_s8  ;;  %20 = sbr.rel (!%p18_p3) target bundleno = 5 (0x5), region = 83 }
 0x303   :  { %802 = vsyncpa [#allocation4], 1 }
 0x304   :  { %804 = vsyncpa [#allocation4 + $0x1], 1 }

</bundles_post_ra>
